<compile_context>
chip_gen: v5e
topology: v5e:2x2
jax: 0.10.0
libtpu: 0.0.40
codegen_flags: <defaults>
</compile_context>

<pallas_src>
import jax
import jax.numpy as jnp
from jax.experimental import pallas as pl
from jax.experimental.pallas import tpu as pltpu


def _round_up(n: int, m: int) -> int:
    return ((n + m - 1) // m) * m


def _policy_kernel(xt_ref, w1t_ref, b1_ref, w2t_ref, b2_ref, o_ref):
    # Batch lives on the lane axis throughout; features/actions on sublanes.
    # fc1: (H, K_pad) @ (K_pad, TB) -> (H, TB).  K_pad = 8; padded w1 cols are 0.
    h = jnp.dot(w1t_ref[...], xt_ref[...],
                preferred_element_type=jnp.float32,
                precision=jax.lax.Precision.HIGHEST)
    h = jnp.maximum(h + b1_ref[...], 0.0)                       # + b1 (H,1), ReLU

    # fc2 on the MXU: (A_pad, H) @ (H, TB) -> (A_pad, TB); padded b2 rows = -1e30.
    logits = jnp.dot(w2t_ref[...], h,
                     preferred_element_type=jnp.float32,
                     precision=jax.lax.Precision.HIGHEST) + b2_ref[...]

    # Numerically stable softmax over the (sublane) action axis.
    # Exact normalization (no approx reciprocal) so rows sum to 1.
    m = jnp.max(logits, axis=0, keepdims=True)
    e = jnp.exp(logits - m)                                     # padded rows -> 0.0
    denom = jnp.sum(e, axis=0, keepdims=True)
    o_ref[...] = (e / denom).astype(o_ref.dtype)


def prepare_params(w1, b1, w2, b2):
    """One-time transpose/pad of parameters into the kernel layout.

    w1: [4, H], b1: [1, H] or [H], w2: [H, A], b2: [1, A] or [A]
    (weights stored as [in_features, out_features], i.e. x @ W + b).
    """
    K, H = w1.shape
    A = w2.shape[1]
    K_SUB = _round_up(K, 8)                 # 4 -> 8 sublanes
    A_PAD = _round_up(A, 8)                 # actions on the sublane axis
    w1t = jnp.zeros((H, K_SUB), w1.dtype).at[:, :K].set(w1.T)
    b1c = jnp.reshape(b1, (H, 1))
    w2t = jnp.zeros((A_PAD, H), w2.dtype).at[:A, :].set(w2.T)
    b2c = jnp.full((A_PAD, 1), -1e30, w2.dtype).at[:A, :].set(jnp.reshape(b2, (A, 1)))
    return w1t, b1c, w2t, b2c, A


def policy_forward(x, params, *, tb_max: int = 2048):
    """x: [B, 4] f32; params: output of prepare_params.  Returns [B, A] probs."""
    w1t, b1c, w2t, b2c, A = params
    B, K = x.shape
    H, K_SUB = w1t.shape
    A_PAD = w2t.shape[0]

    # Batch maps to lanes -> tiles must be multiples of 128 lanes.
    tb_max = max(_round_up(tb_max, 128), 128)
    TB = min(tb_max, _round_up(B, 128))
    # v7x megacore: if the whole batch fits in one tile, split into >=2 parallel
    # tiles so dimension_semantics=("parallel",) can use both TensorCores.
    if B <= TB and TB >= 256:
        TB = _round_up(-(-B // 2), 128)
    B_PAD = _round_up(B, TB)

    # x^T padded to (8, B_PAD): ~2x read amplification instead of ~32x.
    xt = jnp.zeros((K_SUB, B_PAD), x.dtype).at[:K, :B].set(x.T)

    grid = (B_PAD // TB,)
    cost = pl.CostEstimate(
        flops=2 * B_PAD * (K_SUB * H + H * A_PAD),
        transcendentals=B_PAD * A_PAD,                       # exp over real lanes only
        bytes_accessed=4 * (K_SUB * B_PAD + H * K_SUB + H
                            + A_PAD * H + A_PAD + A_PAD * B_PAD),
    )

    out_pad = pl.pallas_call(
        _policy_kernel,
        out_shape=jax.ShapeDtypeStruct((A_PAD, B_PAD), jnp.float32),
        grid=grid,
        in_specs=[
            pl.BlockSpec((K_SUB, TB), lambda i: (0, i)),     # x^T: tiled over batch lanes
            pl.BlockSpec((H, K_SUB), lambda i: (0, 0)),      # w1^T: VMEM-resident
            pl.BlockSpec((H, 1), lambda i: (0, 0)),          # b1 column
            pl.BlockSpec((A_PAD, H), lambda i: (0, 0)),      # w2^T
            pl.BlockSpec((A_PAD, 1), lambda i: (0, 0)),      # b2 column
        ],
        out_specs=pl.BlockSpec((A_PAD, TB), lambda i: (0, i)),
        compiler_params=pltpu.CompilerParams(
            dimension_semantics=("parallel",)),              # shard batch tiles across TCs
        cost_estimate=cost,
    )(xt, w1t, b1c, w2t, b2c)

    return out_pad[:A, :B].T                                 # -> [B, A]


def init_params(key, action_size: int):
    """Deterministic init mimicking nn.Linear defaults (uniform +-1/sqrt(fan_in))."""
    k1, k2, k3, k4 = jax.random.split(key, 4)
    bound1 = 1.0 / jnp.sqrt(4.0)
    bound2 = 1.0 / jnp.sqrt(128.0)
    w1 = jax.random.uniform(k1, (4, 128), jnp.float32, -bound1, bound1)
    b1 = jax.random.uniform(k2, (1, 128), jnp.float32, -bound1, bound1)
    w2 = jax.random.uniform(k3, (128, action_size), jnp.float32, -bound2, bound2)
    b2 = jax.random.uniform(k4, (1, action_size), jnp.float32, -bound2, bound2)
    return w1, b1, w2, b2


def _reference(x, w1, b1, w2, b2):
    hp = jax.lax.Precision.HIGHEST
    h = jnp.maximum(jnp.dot(x, w1, precision=hp) + b1, 0.0)
    return jax.nn.softmax(jnp.dot(h, w2, precision=hp) + b2, axis=-1)


if __name__ == "__main__":
    key = jax.random.PRNGKey(0)
    k_x, k_p, k_x2 = jax.random.split(key, 3)

    batch = 2
    action_size = 8

    x = jax.random.normal(k_x, (batch, 4), dtype=jnp.float32)
    w1, b1, w2, b2 = init_params(k_p, action_size)
    params = prepare_params(w1, b1, w2, b2)          # hoisted out of the hot path

    out = jax.block_until_ready(policy_forward(x, params))

    # sanity: shape, softmax rows sum to ~1 (exact normalization now)
    assert out.shape == (batch, action_size)
    assert jnp.allclose(jnp.sum(out, axis=-1), 1.0, atol=1e-3)

    # cross-check against plain-JAX reference
    ref = _reference(x, w1, b1, w2, b2)
    assert jnp.allclose(out, ref, atol=1e-3, rtol=1e-3)

    # exercise the multi-tile / padded path (B not a multiple of the tile, grid > 1)
    x_big = jax.random.normal(k_x2, (300, 4), dtype=jnp.float32)
    out_big = jax.block_until_ready(policy_forward(x_big, params, tb_max=128))
    ref_big = _reference(x_big, w1, b1, w2, b2)
    assert out_big.shape == (300, action_size)
    assert jnp.allclose(out_big, ref_big, atol=1e-3, rtol=1e-3)

    print("KERNEL_OK")
</pallas_src>

<mosaic_0001>
module attributes {stable_mosaic.version = 11 : i64} {
  func.func @_policy_kernel(%arg0: i32, %arg1: memref<8x128xf32, #tpu.memory_space<vmem>>, %arg2: memref<128x8xf32, #tpu.memory_space<vmem>>, %arg3: memref<128x1xf32, #tpu.memory_space<vmem>>, %arg4: memref<8x128xf32, #tpu.memory_space<vmem>>, %arg5: memref<8x1xf32, #tpu.memory_space<vmem>>, %arg6: memref<8x128xf32, #tpu.memory_space<vmem>>) attributes {dimension_semantics = [#tpu.dimension_semantics<parallel>], iteration_bounds = array<i64: 1>, scalar_prefetch = 0 : i64, scratch_operands = 0 : i64, tpu.core_type = #tpu.core_type<tc>, window_params = [{transform_indices = @transform_0, window_bounds = array<i64: 8, 128>}, {pipeline_mode = #tpu.pipeline_mode<synchronous>, transform_indices = @transform_1, window_bounds = array<i64: 128, 8>}, {pipeline_mode = #tpu.pipeline_mode<synchronous>, transform_indices = @transform_2, window_bounds = array<i64: 128, 1>}, {pipeline_mode = #tpu.pipeline_mode<synchronous>, transform_indices = @transform_3, window_bounds = array<i64: 8, 128>}, {pipeline_mode = #tpu.pipeline_mode<synchronous>, transform_indices = @transform_4, window_bounds = array<i64: 8, 1>}, {transform_indices = @transform_5, window_bounds = array<i64: 8, 128>}]} {
    %c0 = arith.constant 0 : index
    %c0_0 = arith.constant 0 : index
    %0 = vector.load %arg2[%c0, %c0_0] : memref<128x8xf32, #tpu.memory_space<vmem>>, vector<128x8xf32>
    %c0_1 = arith.constant 0 : index
    %c0_2 = arith.constant 0 : index
    %1 = vector.load %arg1[%c0_1, %c0_2] : memref<8x128xf32, #tpu.memory_space<vmem>>, vector<8x128xf32>
    %cst = arith.constant dense<0.000000e+00> : vector<128x128xf32>
    %2 = tpu.matmul %0, %1, %cst {dimension_numbers = #tpu.dot_dimension_numbers<[1], [0], [0], [1], [0, 0, 1, 1], [], []>, precision = #tpu.contract_precision<fp32>} : vector<128x8xf32>, vector<8x128xf32>, vector<128x128xf32> -> vector<128x128xf32>
    %c0_3 = arith.constant 0 : index
    %c0_4 = arith.constant 0 : index
    %3 = vector.load %arg3[%c0_3, %c0_4] : memref<128x1xf32, #tpu.memory_space<vmem>>, vector<128x1xf32>
    %4 = vector.broadcast %3 : vector<128x1xf32> to vector<128x128xf32>
    %5 = arith.addf %2, %4 : vector<128x128xf32>
    %cst_5 = arith.constant 0.000000e+00 : f32
    %6 = vector.broadcast %cst_5 : f32 to vector<128x128xf32>
    %7 = arith.maximumf %5, %6 : vector<128x128xf32>
    %c0_6 = arith.constant 0 : index
    %c0_7 = arith.constant 0 : index
    %8 = vector.load %arg4[%c0_6, %c0_7] : memref<8x128xf32, #tpu.memory_space<vmem>>, vector<8x128xf32>
    %cst_8 = arith.constant dense<0.000000e+00> : vector<8x128xf32>
    %9 = tpu.matmul %8, %7, %cst_8 {dimension_numbers = #tpu.dot_dimension_numbers<[1], [0], [0], [1], [0, 0, 1, 1], [], []>, precision = #tpu.contract_precision<fp32>} : vector<8x128xf32>, vector<128x128xf32>, vector<8x128xf32> -> vector<8x128xf32>
    %c0_9 = arith.constant 0 : index
    %c0_10 = arith.constant 0 : index
    %10 = vector.load %arg5[%c0_9, %c0_10] : memref<8x1xf32, #tpu.memory_space<vmem>>, vector<8x1xf32>
    %11 = vector.broadcast %10 : vector<8x1xf32> to vector<8x128xf32>
    %12 = arith.addf %9, %11 : vector<8x128xf32>
    %cst_11 = arith.constant dense<0xFF800000> : vector<128xf32>
    %13 = vector.multi_reduction <maximumf>, %12, %cst_11 [0] : vector<8x128xf32> to vector<128xf32>
    %14 = vector.shape_cast %13 : vector<128xf32> to vector<1x128xf32>
    %15 = vector.broadcast %14 : vector<1x128xf32> to vector<8x128xf32>
    %16 = arith.subf %12, %15 : vector<8x128xf32>
    %17 = math.exp %16 : vector<8x128xf32>
    %cst_12 = arith.constant dense<0.000000e+00> : vector<128xf32>
    %18 = vector.multi_reduction <add>, %17, %cst_12 [0] : vector<8x128xf32> to vector<128xf32>
    %19 = vector.shape_cast %18 : vector<128xf32> to vector<1x128xf32>
    %20 = vector.broadcast %19 : vector<1x128xf32> to vector<8x128xf32>
    %21 = arith.divf %17, %20 : vector<8x128xf32>
    %c0_13 = arith.constant 0 : index
    %c0_14 = arith.constant 0 : index
    %22 = vector.load %arg6[%c0_13, %c0_14] : memref<8x128xf32, #tpu.memory_space<vmem>>, vector<8x128xf32>
    tpu.vector_store %arg6[%c0_13, %c0_14], %21 {strides = array<i32>} : memref<8x128xf32, #tpu.memory_space<vmem>>, vector<8x128xf32>,
    return
  }
  func.func @transform_0(%arg0: i32) -> (i32, i32) {
    %c0_i32 = arith.constant 0 : i32
    %c0_i32_0 = arith.constant 0 : i32
    return %c0_i32, %arg0 : i32, i32
  }
  func.func @transform_1(%arg0: i32) -> (i32, i32) {
    %c0_i32 = arith.constant 0 : i32
    %c0_i32_0 = arith.constant 0 : i32
    %c0_i32_1 = arith.constant 0 : i32
    return %c0_i32, %c0_i32_0 : i32, i32
  }
  func.func @transform_2(%arg0: i32) -> (i32, i32) {
    %c0_i32 = arith.constant 0 : i32
    %c0_i32_0 = arith.constant 0 : i32
    %c0_i32_1 = arith.constant 0 : i32
    return %c0_i32, %c0_i32_0 : i32, i32
  }
  func.func @transform_3(%arg0: i32) -> (i32, i32) {
    %c0_i32 = arith.constant 0 : i32
    %c0_i32_0 = arith.constant 0 : i32
    %c0_i32_1 = arith.constant 0 : i32
    return %c0_i32, %c0_i32_0 : i32, i32
  }
  func.func @transform_4(%arg0: i32) -> (i32, i32) {
    %c0_i32 = arith.constant 0 : i32
    %c0_i32_0 = arith.constant 0 : i32
    %c0_i32_1 = arith.constant 0 : i32
    return %c0_i32, %c0_i32_0 : i32, i32
  }
  func.func @transform_5(%arg0: i32) -> (i32, i32) {
    %c0_i32 = arith.constant 0 : i32
    %c0_i32_0 = arith.constant 0 : i32
    return %c0_i32, %arg0 : i32, i32
  }
}

</mosaic_0001>

<bundles_post_ra>
// kernel: tpu_custom_call.1
= control target key start
LH: loop header
LB: loop body
LE: loop exit
PB: predicated region body
PF: predicated region fallthrough
CT: control target
= control target key end

     0   :  { %vm134_vm0 = vcmask 64512   ;;  %v1242_v2 = vmov 0   ;;  %s1895_s0 = inlined_call_operand.vmem [shape: f32[8,128], index: 0, kind: input, shape index: {}]   ;;  %s1896_s1 = inlined_call_operand.vmem [shape: f32[128,8], index: 1, kind: input, shape index: {}]   ;;  %s1897_s2 = inlined_call_operand.vmem [shape: f32[128,1], index: 2, kind: input, shape index: {}]   ;;  %s1898_s3 = inlined_call_operand.vmem [shape: f32[8,128], index: 3, kind: input, shape index: {}]   ;;  %s1899_s4 = inlined_call_operand.vmem [shape: f32[8,1], index: 4, kind: input, shape index: {}]   ;;  %s1900_s5 = inlined_call_operand.hbm [shape: f32[8,128], index: 5, kind: output, shape index: {}]  }
   0x1   :  { %v53_v0 = vld [vmem:[%s1897_s2 + $0x78] sm:$0xff]  ;;  %v51_v1 = vld [vmem:[%s1897_s2 + $0x68] sm:$0xff]  ;;  %1209 = vset.pattern.permute.xlu0 %v1242_v2  ;;  %1210 = vset.pattern.permute.xlu1 %v1242_v2  ;;  %v37_v3 = vld [vmem:[%s1895_s0] sm:$0xff] }
   0x2   :  { %v21_v4 = vld [vmem:[%s1896_s1] sm:$0xff]  ;;  %v34_v5 = vld [vmem:[%s1896_s1 + $0x68] sm:$0xff]  ;;  %131 = vperm.xlu0 %1209, %v53_v0   ;;  %121 = vperm.xlu1 %1210, %v51_v1   ;;  %v198_v6 = vand.u32 4294901760, %v37_v3  ;;  %v35_v13 = vld [vmem:[%s1896_s1 + $0x70] sm:$0xff] }
   0x3   :  { %v136_v7 = vsel %vm134_vm0, %v21_v4, 0  ;;  %v175_v8 = vsel %vm134_vm0, %v34_v5, 0  ;;  %v22_v9 = vld [vmem:[%s1896_s1 + $0x8] sm:$0xff]  ;;  %1211 = vset.pattern.permute.xlu2 %v1242_v2  ;;  %v49_v14 = vld [vmem:[%s1897_s2 + $0x58] sm:$0xff]  ;;  %v178_v17 = vsel %vm134_vm0, %v35_v13, 0  ;;  %v23_v18 = vld [vmem:[%s1896_s1 + $0x10] sm:$0xff] }
   0x4   :  { %v1294_v10 = vand.u32 4294901760, %v136_v7  ;;  %v1296_v11 = vand.u32 4294901760, %v175_v8  ;;  %v139_v12 = vsel %vm134_vm0, %v22_v9, 0  ;;  %199 = vmatpush.msra.mxu0 %v198_v6  ;;  %1205 = vmatpush.msra.mxu2 %v198_v6  ;;  %v345_v15 = vsub.f32 %v37_v3, %v198_v6  ;;  %v36_v19 = vld [vmem:[%s1896_s1 + $0x78] sm:$0xff]  ;;  %v52_v27 = vld [vmem:[%s1897_s2 + $0x70] sm:$0xff]  ;;  %v50_v30 = vld [vmem:[%s1897_s2 + $0x60] sm:$0xff] }
   0x5   :  { %v1305_v16 = vand.u32 4294901760, %v139_v12  ;;  %v1320_v22 = vand.u32 4294901760, %v178_v17  ;;  %111 = vperm.xlu2 %1211, %v49_v14   ;;  %v142_v23 = vsel %vm134_vm0, %v23_v18, 0  ;;  %v181_v26 = vsel %vm134_vm0, %v36_v19, 0 }
   0x6   :  { %v1315_v20 = vsub.f32 %v136_v7, %v1294_v10  ;;  %v1318_v21 = vsub.f32 %v175_v8, %v1296_v11  ;;  %v346_v24 = vand.u32 4294901760, %v345_v15  ;;  %432 = vmatpush.msrb.mxu2 %v345_v15  ;;  %v1338_v33 = vand.u32 4294901760, %v142_v23 }
   0x7   :  { %v1324_v25 = vsub.f32 %v139_v12, %v1305_v16  ;;  %v1336_v31 = vsub.f32 %v178_v17, %v1320_v22  ;;  %v1340_v34 = vand.u32 4294901760, %v181_v26 }
   0x8   :  { %v202_v28 = vand.u32 4294901760, %v1315_v20  ;;  %v306_v29 = vand.u32 4294901760, %v1318_v21  ;;  %v347_v32 = vsub.f32 %v345_v15, %v346_v24  ;;  %646 = vmatpush.msrb.mxu0 %v346_v24 }
   0x9   :  { %10 = vsyncpa [#allocation3], 0  ;;  %v210_v37 = vand.u32 4294901760, %v1324_v25  ;;  %v314_v38 = vand.u32 4294901760, %v1336_v31  ;;  %v24_v42 = vld [vmem:[%s1896_s1 + $0x18] sm:$0xff]  ;;  %v1354_v43 = vsub.f32 %v142_v23, %v1338_v33  ;;  %v48_v44 = vld [vmem:[%s1897_s2 + $0x50] sm:$0xff]  ;;  %v1366_v47 = vsub.f32 %v181_v26, %v1340_v34 }
   0xa   :  { %v203_v35 = vsub.f32 %v1315_v20, %v202_v28  ;;  %v307_v36 = vsub.f32 %v1318_v21, %v306_v29  ;;  %126 = vperm.xlu0 %1209, %v52_v27   ;;  %v348_v39 = vand.u32 4294901760, %v347_v32  ;;  %116 = vperm.xlu1 %1210, %v50_v30   ;;  %v145_v48 = vsel %vm134_vm0, %v24_v42, 0  ;;  %v47_v49 = vld [vmem:[%s1897_s2 + $0x48] sm:$0xff]  ;;  %v46_v50 = vld [vmem:[%s1897_s2 + $0x40] sm:$0xff]  ;;  %v45_v57 = vld [vmem:[%s1897_s2 + $0x38] sm:$0xff]  ;;  %s1196_s10 = sshll.u32 %s1900_s5, 4  ;;  %s1197_s10 = int_to_ptr.hbm [resolvable:$true] %s1196_s10 }
   0xb   :  { %v211_v45 = vsub.f32 %v1324_v25, %v210_v37  ;;  %v315_v46 = vsub.f32 %v1336_v31, %v314_v38  ;;  %v218_v51 = vand.u32 4294901760, %v1354_v43  ;;  %v322_v54 = vand.u32 4294901760, %v1366_v47  ;;  %v25_v56 = vld [vmem:[%s1896_s1 + $0x20] sm:$0xff]  ;;  %v44_v62 = vld [vmem:[%s1897_s2 + $0x30] sm:$0xff]  ;;  %v43_v63 = vld [vmem:[%s1897_s2 + $0x28] sm:$0xff] }
   0xc   :  { %v204_v40 = vand.u32 4294901760, %v203_v35  ;;  %v308_v41 = vand.u32 4294901760, %v307_v36  ;;  %349 = vmatpush.msra.mxu1 %v348_v39  ;;  %1206 = vmatpush.msra.mxu3 %v348_v39  ;;  %v1379_v55 = vand.u32 4294901760, %v145_v48  ;;  %v148_v61 = vsel %vm134_vm0, %v25_v56, 0  ;;  %v26_v4 = vld [vmem:[%s1896_s1 + $0x28] sm:$0xff]  ;;  %v42_v5 = vld [vmem:[%s1897_s2 + $0x20] sm:$0xff] }
   0xd   :  { %351 = vmatmul.f32.vlgmr.msra.gmra.mxu1 %v1294_v10  ;;  %403 = vmatmul.f32.vlgmr.msra.gmra.mxu3 %v1296_v11  ;;  %v212_v52 = vand.u32 4294901760, %v211_v45  ;;  %v316_v53 = vand.u32 4294901760, %v315_v46  ;;  %v219_v58 = vsub.f32 %v1354_v43, %v218_v51  ;;  %v323_v59 = vsub.f32 %v1366_v47, %v322_v54  ;;  %v41_v9 = vld [vmem:[%s1897_s2 + $0x18] sm:$0xff]  ;;  %v40_v12 = vld [vmem:[%s1897_s2 + $0x10] sm:$0xff]  ;;  %v39_v18 = vld [vmem:[%s1897_s2 + $0x8] sm:$0xff] }
   0xe   :  { %205 = vmatmul.f32.vlgmr.msra.gmra.mxu0 %v204_v40  ;;  %309 = vmatmul.f32.vlgmr.msra.gmra.mxu2 %v308_v41  ;;  %v1394_v60 = vsub.f32 %v145_v48, %v1379_v55  ;;  %v1406_v3 = vand.u32 4294901760, %v148_v61  ;;  %v151_v8 = vsel %vm134_vm0, %v26_v4, 0  ;;  %v27_v17 = vld [vmem:[%s1896_s1 + $0x30] sm:$0xff]  ;;  %v38_v26 = vld [vmem:[%s1897_s2] sm:$0xff]  ;;  %v28_v35 = vld [vmem:[%s1896_s1 + $0x38] sm:$0xff] }
   0xf   :  { %106 = vperm.xlu2 %1211, %v48_v44   ;;  %530 = vmatpush.msrb.mxu3 %v198_v6  ;;  %v220_v0 = vand.u32 4294901760, %v219_v58  ;;  %v324_v1 = vand.u32 4294901760, %v323_v59  ;;  %v1430_v15 = vand.u32 4294901760, %v151_v8  ;;  %v154_v24 = vsel %vm134_vm0, %v27_v17, 0  ;;  %v29_v42 = vld [vmem:[%s1896_s1 + $0x40] sm:$0xff] }
  0x10   :  { %728 = vmatpush.msrb.mxu1 %v198_v6  ;;  %v226_v2 = vand.u32 4294901760, %v1394_v60  ;;  %v1418_v7 = vsub.f32 %v148_v61, %v1406_v3  ;;  %v1448_v32 = vand.u32 4294901760, %v154_v24  ;;  %v157_v36 = vsel %vm134_vm0, %v28_v35, 0 }
  0x11   :  { %v241_v23 = vsub.f32 %v151_v8, %v1430_v15  ;;  %v1459_v41 = vand.u32 4294901760, %v157_v36  ;;  %v33_v8 = vld [vmem:[%s1896_s1 + $0x60] sm:$0xff] }
  0x12   :  { %101 = vperm.xlu0 %1209, %v47_v49   ;;  %96 = vperm.xlu1 %1210, %v46_v50   ;;  %v227_v6 = vsub.f32 %v1394_v60, %v226_v2  ;;  %v234_v14 = vand.u32 4294901760, %v1418_v7  ;;  %v30_v49 = vld [vmem:[%s1896_s1 + $0x48] sm:$0xff] }
  0x13   :  { %v242_v30 = vand.u32 4294901760, %v241_v23  ;;  %v257_v45 = vsub.f32 %v157_v36, %v1459_v41 }
  0x14   :  { %v228_v13 = vand.u32 4294901760, %v227_v6  ;;  %v235_v19 = vsub.f32 %v1418_v7, %v234_v14 }
  0x15   :  { %355 = vmatmul.f32.gmra.mxu1 %v1305_v16  ;;  %407 = vmatmul.f32.gmra.mxu3 %v1320_v22  ;;  %v258_v46 = vand.u32 4294901760, %v257_v45 }
  0x16   :  { %213 = vmatmul.f32.gmra.mxu0 %v212_v52  ;;  %317 = vmatmul.f32.gmra.mxu2 %v316_v53  ;;  %v236_v27 = vand.u32 4294901760, %v235_v19 }
  0x17   :  { %91 = vperm.xlu2 %1211, %v45_v57   ;;  %v259_v50 = vsub.f32 %v257_v45, %v258_v46  ;;  %v31_v57 = vld [vmem:[%s1896_s1 + $0x50] sm:$0xff] }
  0x1a   :  { %86 = vperm.xlu0 %1209, %v44_v62   ;;  %81 = vperm.xlu1 %1210, %v43_v63  }
  0x1d   :  { %359 = vmatmul.f32.gmra.mxu1 %v1338_v33  ;;  %411 = vmatmul.f32.gmra.mxu3 %v1340_v34 }
  0x1e   :  { %221 = vmatmul.f32.gmra.mxu0 %v220_v0  ;;  %325 = vmatmul.f32.gmra.mxu2 %v324_v1  ;;  %v32_v0 = vld [vmem:[%s1896_s1 + $0x58] sm:$0xff] }
  0x1f   :  { %76 = vperm.xlu2 %1211, %v42_v5   ;;  %v169_v4 = vsel %vm134_vm0, %v32_v0, 0 }
  0x22   :  { %71 = vperm.xlu0 %1209, %v41_v9   ;;  %66 = vperm.xlu1 %1210, %v40_v12  }
  0x25   :  { %363 = vmatmul.f32.gmra.mxu1 %v1379_v55  ;;  %534 = vmatmul.f32.vlgmr.msrb.gmra.mxu3 %v202_v28  ;;  %v249_v28 = vsub.f32 %v154_v24, %v1448_v32 }
  0x26   :  { %229 = vmatmul.f32.gmra.mxu0 %v228_v13  ;;  %435 = vmatmul.f32.vlgmr.msrb.gmra.mxu2 %v1315_v20  ;;  %v243_v20 = vsub.f32 %v241_v23, %v242_v30  ;;  %v172_v13 = vsel %vm134_vm0, %v33_v8, 0 }
  0x27   :  { %61 = vperm.xlu2 %1211, %v39_v18   ;;  %v250_v40 = vand.u32 4294901760, %v249_v28  ;;  %v1506_v18 = vand.u32 4294901760, %v172_v13 }
  0x28   :  { %v244_v39 = vand.u32 4294901760, %v243_v20 }
  0x29   :  { %v251_v44 = vsub.f32 %v249_v28, %v250_v40 }
  0x2a   :  { %56 = vperm.xlu0 %1209, %v38_v26  }
  0x2d   :  { %367 = vmatmul.f32.gmra.mxu1 %v1406_v3  ;;  %540 = vmatmul.f32.gmra.mxu3 %v210_v37  ;;  %v252_v37 = vand.u32 4294901760, %v251_v44 }
  0x2e   :  { %237 = vmatmul.f32.gmra.mxu0 %v236_v27  ;;  %440 = vmatmul.f32.gmra.mxu2 %v1324_v25  ;;  %v160_v25 = vsel %vm134_vm0, %v29_v42, 0 }
  0x2f   :  { %v1470_v48 = vand.u32 4294901760, %v160_v25 }
  0x31   :  { %v265_v52 = vsub.f32 %v160_v25, %v1470_v48 }
  0x33   :  { %v266_v53 = vand.u32 4294901760, %v265_v52 }
  0x35   :  { %371 = vmatmul.f32.gmra.mxu1 %v1430_v15  ;;  %546 = vmatmul.f32.gmra.mxu3 %v218_v51  ;;  %v260_v51 = vand.u32 4294901760, %v259_v50  ;;  %v267_v58 = vsub.f32 %v265_v52, %v266_v53 }
  0x36   :  { %245 = vmatmul.f32.gmra.mxu0 %v244_v39  ;;  %445 = vmatmul.f32.gmra.mxu2 %v1354_v43  ;;  %v163_v43 = vsel %vm134_vm0, %v30_v49, 0 }
  0x37   :  { %v1481_v56 = vand.u32 4294901760, %v163_v43  ;;  %v268_v61 = vand.u32 4294901760, %v267_v58 }
  0x39   :  { %v273_v59 = vsub.f32 %v163_v43, %v1481_v56 }
  0x3b   :  { %v274_v62 = vand.u32 4294901760, %v273_v59 }
  0x3d   :  { %375 = vmatmul.f32.gmra.mxu1 %v1448_v32  ;;  %552 = vmatmul.f32.gmra.mxu3 %v226_v2  ;;  %v275_v1 = vsub.f32 %v273_v59, %v274_v62 }
  0x3e   :  { %253 = vmatmul.f32.gmra.mxu0 %v252_v37  ;;  %450 = vmatmul.f32.gmra.mxu2 %v1394_v60  ;;  %v166_v60 = vsel %vm134_vm0, %v31_v57, 0 }
  0x3f   :  { %v1490_v63 = vand.u32 4294901760, %v166_v60  ;;  %v276_v5 = vand.u32 4294901760, %v275_v1 }
  0x41   :  { %v281_v2 = vsub.f32 %v166_v60, %v1490_v63 }
  0x43   :  { %v282_v6 = vand.u32 4294901760, %v281_v2 }
  0x45   :  { %379 = vmatmul.f32.gmra.mxu1 %v1459_v41  ;;  %558 = vmatmul.f32.gmra.mxu3 %v234_v14  ;;  %v283_v9 = vsub.f32 %v281_v2, %v282_v6 }
  0x46   :  { %261 = vmatmul.f32.gmra.mxu0 %v260_v51  ;;  %455 = vmatmul.f32.gmra.mxu2 %v1418_v7  ;;  %v1498_v7 = vand.u32 4294901760, %v169_v4 }
  0x47   :  { %v284_v14 = vand.u32 4294901760, %v283_v9 }
  0x48   :  { %v289_v12 = vsub.f32 %v169_v4, %v1498_v7 }
  0x4a   :  { %v290_v17 = vand.u32 4294901760, %v289_v12 }
  0x4c   :  { %v291_v19 = vsub.f32 %v289_v12, %v290_v17 }
  0x4d   :  { %383 = vmatmul.f32.gmra.mxu1 %v1470_v48  ;;  %564 = vmatmul.f32.gmra.mxu3 %v242_v30 }
  0x4e   :  { %269 = vmatmul.f32.gmra.mxu0 %v268_v61  ;;  %460 = vmatmul.f32.gmra.mxu2 %v241_v23  ;;  %v297_v23 = vsub.f32 %v172_v13, %v1506_v18  ;;  %v292_v24 = vand.u32 4294901760, %v291_v19 }
  0x50   :  { %v298_v26 = vand.u32 4294901760, %v297_v23 }
  0x52   :  { %v299_v27 = vsub.f32 %v297_v23, %v298_v26 }
  0x54   :  { %v300_v30 = vand.u32 4294901760, %v299_v27 }
  0x55   :  { %387 = vmatmul.f32.gmra.mxu1 %v1481_v56  ;;  %570 = vmatmul.f32.gmra.mxu3 %v250_v40 }
  0x56   :  { %277 = vmatmul.f32.gmra.mxu0 %v276_v5  ;;  %465 = vmatmul.f32.gmra.mxu2 %v249_v28 }
  0x5d   :  { %391 = vmatmul.f32.gmra.mxu1 %v1490_v63  ;;  %576 = vmatmul.f32.gmra.mxu3 %v258_v46 }
  0x5e   :  { %285 = vmatmul.f32.gmra.mxu0 %v284_v14  ;;  %470 = vmatmul.f32.gmra.mxu2 %v257_v45 }
  0x5f   :  { %v1516_v28 = vpop.permute.xlu2 %111 }
  0x65   :  { %395 = vmatmul.f32.gmra.mxu1 %v1498_v7  ;;  %582 = vmatmul.f32.gmra.mxu3 %v266_v53 }
  0x66   :  { %293 = vmatmul.f32.gmra.mxu0 %v292_v24  ;;  %475 = vmatmul.f32.gmra.mxu2 %v265_v52 }
  0x69   :  { %v1522_v40 = vpop.permute.xlu2 %106 }
  0x6d   :  { %399 = vmatmul.f32.gmra.mxu1 %v1506_v18  ;;  %588 = vmatmul.f32.gmra.mxu3 %v274_v62 }
  0x6e   :  { %301 = vmatmul.f32.gmra.mxu0 %v300_v30  ;;  %480 = vmatmul.f32.gmra.mxu2 %v273_v59 }
  0x71   :  { %v1535_v50 = vpop.permute.xlu2 %91 }
  0x74   :  { %v132_v35 = vpop.permute.xlu0 %131  ;;  %v122_v39 = vpop.permute.xlu1 %121 }
  0x75   :  { %594 = vmatmul.f32.gmra.mxu3 %v282_v6  ;;  %730 = vmatmul.f32.vlgmr.msrb.gmra.mxu1 %v1294_v10 }
  0x76   :  { %485 = vmatmul.f32.gmra.mxu2 %v281_v2  ;;  %648 = vmatmul.f32.vlgmr.msrb.gmra.mxu0 %v1294_v10 }
  0x79   :  { %v77_v60 = vpop.permute.xlu2 %76 }
  0x7c   :  { %v127_v20 = vpop.permute.xlu0 %126 }
  0x7d   :  { %600 = vmatmul.f32.gmra.mxu3 %v290_v17  ;;  %734 = vmatmul.f32.gmra.mxu1 %v1305_v16 }
  0x7e   :  { %490 = vmatmul.f32.gmra.mxu2 %v289_v12  ;;  %652 = vmatmul.f32.gmra.mxu0 %v1305_v16 }
  0x81   :  { %v62_v4 = vpop.permute.xlu2 %61 }
  0x84   :  { %v1518_v36 = vpop.permute.xlu0 %101 }
  0x85   :  { %606 = vmatmul.f32.gmra.mxu3 %v298_v26  ;;  %738 = vmatmul.f32.gmra.mxu1 %v1338_v33 }
  0x86   :  { %495 = vmatmul.f32.gmra.mxu2 %v297_v23  ;;  %656 = vmatmul.f32.gmra.mxu0 %v1338_v33  ;;  %v1531_v33 = vpop.permute.xlu1 %116 }
  0x8a   :  { %v352_v42 = vpop.f32.mrf.mxu1 }
  0x8b   :  { %v206_v10 = vpop.f32.mrf.mxu0 }
  0x8c   :  { %v1524_v44 = vpop.permute.xlu0 %86 }
  0x8d   :  { %612 = vmatmul.f32.gmra.mxu3 %v306_v29  ;;  %742 = vmatmul.f32.gmra.mxu1 %v1379_v55 }
  0x8e   :  { %500 = vmatmul.f32.gmra.mxu2 %v1318_v21  ;;  %660 = vmatmul.f32.gmra.mxu0 %v1379_v55  ;;  %v1544_v57 = vpop.permute.xlu1 %96 }
  0x90   :  { %v404_v25 = vpop.f32.mrf.mxu3 }
  0x91   :  { %v310_v16 = vpop.f32.mrf.mxu2 }
  0x92   :  { %v311_v45 = vadd.f32 %v310_v16, %v122_v39  ;;  %v356_v49 = vpop.f32.mrf.mxu1 }
  0x93   :  { %v214_v37 = vpop.f32.mrf.mxu0 }
  0x94   :  { %v1533_v46 = vadd.f32 %v404_v25, %v311_v45  ;;  %v72_v52 = vpop.permute.xlu0 %71  ;;  %v215_v8 = vadd.f32 %v214_v37, %v62_v4 }
  0x95   :  { %618 = vmatmul.f32.gmra.mxu3 %v314_v38  ;;  %746 = vmatmul.f32.gmra.mxu1 %v1406_v3 }
  0x96   :  { %505 = vmatmul.f32.gmra.mxu2 %v1336_v31  ;;  %664 = vmatmul.f32.gmra.mxu0 %v1406_v3  ;;  %v82_v2 = vpop.permute.xlu1 %81  ;;  %v357_v12 = vadd.f32 %v356_v49, %v215_v8 }
  0x98   :  { %v408_v55 = vpop.f32.mrf.mxu3 }
  0x99   :  { %v318_v21 = vpop.f32.mrf.mxu2 }
  0x9a   :  { %v319_v29 = vadd.f32 %v318_v21, %v127_v20  ;;  %v360_v53 = vpop.f32.mrf.mxu1 }
  0x9b   :  { %v222_v43 = vpop.f32.mrf.mxu0 }
  0x9c   :  { %v1542_v51 = vadd.f32 %v408_v55, %v319_v29  ;;  %v57_v58 = vpop.permute.xlu0 %56 }
  0x9d   :  { %v207_v59 = vadd.f32 %v206_v10, %v57_v58  ;;  %624 = vmatmul.f32.gmra.mxu3 %v322_v54  ;;  %750 = vmatmul.f32.gmra.mxu1 %v1430_v15 }
  0x9e   :  { %510 = vmatmul.f32.gmra.mxu2 %v1366_v47  ;;  %668 = vmatmul.f32.gmra.mxu0 %v1430_v15  ;;  %v67_v13 = vpop.permute.xlu1 %66 }
  0x9f   :  { %v353_v31 = vadd.f32 %v352_v42, %v207_v59 }
  0xa0   :  { %v412_v61 = vpop.f32.mrf.mxu3 }
  0xa1   :  { %v326_v38 = vpop.f32.mrf.mxu2 }
  0xa2   :  { %v327_v3 = vadd.f32 %v326_v38, %v132_v35  ;;  %v364_v1 = vpop.f32.mrf.mxu1 }
  0xa3   :  { %v230_v62 = vpop.f32.mrf.mxu0 }
  0xa4   :  { %v1551_v0 = vadd.f32 %v412_v61, %v327_v3  ;;  %v231_v42 = vadd.f32 %v230_v62, %v72_v52  ;;  %v811_v3 = vld [vmem:[%s1899_s4] sm:$0xff] }
  0xa5   :  { %754 = vmatmul.f32.gmra.mxu1 %v1448_v32  ;;  %814 = vperm.xlu1 %1210, %v811_v3  }
  0xa6   :  { %672 = vmatmul.f32.gmra.mxu0 %v1448_v32  ;;  %v223_v32 = vadd.f32 %v222_v43, %v67_v13  ;;  %v365_v49 = vadd.f32 %v364_v1, %v231_v42 }
  0xa8   :  { %v535_v47 = vpop.f32.mrf.mxu3  ;;  %v361_v35 = vadd.f32 %v360_v53, %v223_v32 }
  0xa9   :  { %v436_v5 = vpop.f32.mrf.mxu2 }
  0xaa   :  { %v437_v6 = vadd.f32 %v436_v5, %v353_v31  ;;  %v368_v9 = vpop.f32.mrf.mxu1 }
  0xab   :  { %v238_v54 = vpop.f32.mrf.mxu0 }
  0xac   :  { %v1555_v15 = vadd.f32 %v535_v47, %v437_v6  ;;  %v239_v43 = vadd.f32 %v238_v54, %v77_v60 }
  0xad   :  { %758 = vmatmul.f32.gmra.mxu1 %v1459_v41 }
  0xae   :  { %676 = vmatmul.f32.gmra.mxu0 %v1459_v41  ;;  %v369_v59 = vadd.f32 %v368_v9, %v239_v43 }
  0xb0   :  { %v541_v19 = vpop.f32.mrf.mxu3 }
  0xb1   :  { %v441_v14 = vpop.f32.mrf.mxu2 }
  0xb2   :  { %v442_v17 = vadd.f32 %v441_v14, %v357_v12  ;;  %v372_v27 = vpop.f32.mrf.mxu1 }
  0xb3   :  { %v246_v23 = vpop.f32.mrf.mxu0 }
  0xb4   :  { %v247_v24 = vadd.f32 %v246_v23, %v82_v2  ;;  %v1559_v26 = vadd.f32 %v541_v19, %v442_v17 }
  0xb5   :  { %762 = vmatmul.f32.gmra.mxu1 %v1470_v48 }
  0xb6   :  { %v373_v30 = vadd.f32 %v372_v27, %v247_v24  ;;  %680 = vmatmul.f32.gmra.mxu0 %v1470_v48 }
  0xb8   :  { %v547_v41 = vpop.f32.mrf.mxu3 }
  0xb9   :  { %v446_v20 = vpop.f32.mrf.mxu2 }
  0xba   :  { %v447_v39 = vadd.f32 %v446_v20, %v361_v35  ;;  %v376_v25 = vpop.f32.mrf.mxu1 }
  0xbb   :  { %v254_v10 = vpop.f32.mrf.mxu0 }
  0xbc   :  { %v255_v16 = vadd.f32 %v254_v10, %v1524_v44  ;;  %v1564_v45 = vadd.f32 %v547_v41, %v447_v39 }
  0xbd   :  { %766 = vmatmul.f32.gmra.mxu1 %v1481_v56 }
  0xbe   :  { %v377_v37 = vadd.f32 %v376_v25, %v255_v16  ;;  %684 = vmatmul.f32.gmra.mxu0 %v1481_v56 }
  0xc0   :  { %v553_v48 = vpop.f32.mrf.mxu3 }
  0xc1   :  { %v451_v21 = vpop.f32.mrf.mxu2 }
  0xc2   :  { %v452_v29 = vadd.f32 %v451_v21, %v365_v49  ;;  %v380_v52 = vpop.f32.mrf.mxu1 }
  0xc3   :  { %v262_v55 = vpop.f32.mrf.mxu0 }
  0xc4   :  { %v263_v53 = vadd.f32 %v262_v55, %v1535_v50  ;;  %v1569_v58 = vadd.f32 %v553_v48, %v452_v29 }
  0xc5   :  { %770 = vmatmul.f32.gmra.mxu1 %v1490_v63 }
  0xc6   :  { %v381_v44 = vadd.f32 %v380_v52, %v263_v53  ;;  %688 = vmatmul.f32.gmra.mxu0 %v1490_v63 }
  0xc8   :  { %v559_v56 = vpop.f32.mrf.mxu3 }
  0xc9   :  { %v456_v31 = vpop.f32.mrf.mxu2 }
  0xca   :  { %v457_v38 = vadd.f32 %v456_v31, %v369_v59  ;;  %v384_v62 = vpop.f32.mrf.mxu1 }
  0xcb   :  { %v270_v61 = vpop.f32.mrf.mxu0 }
  0xcc   :  { %v271_v50 = vadd.f32 %v270_v61, %v1544_v57  ;;  %v560_v60 = vadd.f32 %v559_v56, %v457_v38 }
  0xcd   :  { %774 = vmatmul.f32.gmra.mxu1 %v1498_v7 }
  0xce   :  { %v385_v1 = vadd.f32 %v384_v62, %v271_v50  ;;  %692 = vmatmul.f32.gmra.mxu0 %v1498_v7 }
  0xd0   :  { %v565_v4 = vpop.f32.mrf.mxu3 }
  0xd1   :  { %v461_v63 = vpop.f32.mrf.mxu2 }
  0xd2   :  { %v462_v2 = vadd.f32 %v461_v63, %v373_v30  ;;  %v388_v54 = vpop.f32.mrf.mxu1 }
  0xd3   :  { %v278_v5 = vpop.f32.mrf.mxu0 }
  0xd4   :  { %v279_v6 = vadd.f32 %v278_v5, %v1518_v36  ;;  %v566_v47 = vadd.f32 %v565_v4, %v462_v2 }
  0xd5   :  { %778 = vmatmul.f32.gmra.mxu1 %v1506_v18 }
  0xd6   :  { %v1580_v8 = vadd.f32 %v388_v54, %v279_v6  ;;  %696 = vmatmul.f32.gmra.mxu0 %v1506_v18 }
  0xd8   :  { %v571_v12 = vpop.f32.mrf.mxu3 }
  0xd9   :  { %v466_v57 = vpop.f32.mrf.mxu2 }
  0xda   :  { %v467_v9 = vadd.f32 %v466_v57, %v377_v37  ;;  %v392_v17 = vpop.f32.mrf.mxu1 }
  0xdb   :  { %v286_v13 = vpop.f32.mrf.mxu0 }
  0xdc   :  { %v287_v7 = vadd.f32 %v286_v13, %v1522_v40  ;;  %v572_v14 = vadd.f32 %v571_v12, %v467_v9 }
  0xdd   :  { %782 = vmatmul.f32.gmra.mxu1 %v1296_v11 }
  0xde   :  { %v1585_v19 = vadd.f32 %v392_v17, %v287_v7  ;;  %700 = vmatmul.f32.gmra.mxu0 %v1296_v11 }
  0xe0   :  { %v577_v32 = vpop.f32.mrf.mxu3 }
  0xe1   :  { %v471_v36 = vpop.f32.mrf.mxu2 }
  0xe2   :  { %v472_v23 = vadd.f32 %v471_v36, %v381_v44  ;;  %v396_v30 = vpop.f32.mrf.mxu1 }
  0xe3   :  { %v294_v24 = vpop.f32.mrf.mxu0 }
  0xe4   :  { %v295_v18 = vadd.f32 %v294_v24, %v1516_v28  ;;  %v578_v27 = vadd.f32 %v577_v32, %v472_v23 }
  0xe5   :  { %786 = vmatmul.f32.gmra.mxu1 %v1320_v22 }
  0xe6   :  { %v1590_v35 = vadd.f32 %v396_v30, %v295_v18  ;;  %704 = vmatmul.f32.gmra.mxu0 %v1320_v22 }
  0xe8   :  { %v583_v39 = vpop.f32.mrf.mxu3 }
  0xe9   :  { %v476_v40 = vpop.f32.mrf.mxu2 }
  0xea   :  { %v477_v20 = vadd.f32 %v476_v40, %v385_v1  ;;  %v400_v42 = vpop.f32.mrf.mxu1 }
  0xeb   :  { %v302_v41 = vpop.f32.mrf.mxu0 }
  0xec   :  { %v303_v11 = vadd.f32 %v302_v41, %v1531_v33  ;;  %v584_v10 = vadd.f32 %v583_v39, %v477_v20 }
  0xed   :  { %790 = vmatmul.f32.gmra.mxu1 %v1340_v34 }
  0xee   :  { %v401_v16 = vadd.f32 %v400_v42, %v303_v11  ;;  %708 = vmatmul.f32.gmra.mxu0 %v1340_v34 }
  0xf1   :  { %v481_v2 = vpop.f32.mrf.mxu2 }
  0xf2   :  { %v731_v37 = vpop.f32.mrf.mxu1 }
  0xf3   :  { %v649_v28 = vpop.f32.mrf.mxu0 }
  0xf4   :  { %v650_v25 = vadd.f32 %v649_v28, %v1555_v15 }
  0xf6   :  { %v1598_v49 = vadd.f32 %v731_v37, %v650_v25 }
  0xfa   :  { %v735_v29 = vpop.f32.mrf.mxu1 }
  0xfb   :  { %v653_v22 = vpop.f32.mrf.mxu0 }
  0xfc   :  { %v654_v21 = vadd.f32 %v653_v22, %v1559_v26 }
  0xfe   :  { %v1601_v48 = vadd.f32 %v735_v29, %v654_v21 }
 0x102   :  { %v739_v43 = vpop.f32.mrf.mxu1 }
 0x103   :  { %v657_v33 = vpop.f32.mrf.mxu0 }
 0x104   :  { %v658_v55 = vadd.f32 %v657_v33, %v1564_v45 }
 0x106   :  { %v1604_v53 = vadd.f32 %v739_v43, %v658_v55 }
 0x10a   :  { %v743_v44 = vpop.f32.mrf.mxu1 }
 0x10b   :  { %v661_v52 = vpop.f32.mrf.mxu0 }
 0x10c   :  { %v662_v34 = vadd.f32 %v661_v52, %v1569_v58  ;;  %v589_v58 = vpop.f32.mrf.mxu3 }
 0x10e   :  { %v1607_v15 = vadd.f32 %v743_v44, %v662_v34 }
 0x112   :  { %v747_v38 = vpop.f32.mrf.mxu1 }
 0x113   :  { %v665_v59 = vpop.f32.mrf.mxu0 }
 0x114   :  { %v666_v31 = vadd.f32 %v665_v59, %v560_v60  ;;  %v486_v60 = vpop.f32.mrf.mxu2  ;;  %v482_v59 = vadd.f32 %v481_v2, %v1580_v8 }
 0x115   :  { %v487_v33 = vadd.f32 %v486_v60, %v1585_v19 }
 0x116   :  { %v1609_v56 = vadd.f32 %v747_v38, %v666_v31 }
 0x11a   :  { %v751_v61 = vpop.f32.mrf.mxu1 }
 0x11b   :  { %v669_v26 = vpop.f32.mrf.mxu0 }
 0x11c   :  { %v670_v3 = vadd.f32 %v669_v26, %v566_v47  ;;  %v595_v47 = vpop.f32.mrf.mxu3  ;;  %v491_v7 = vpop.f32.mrf.mxu2 }
 0x11d   :  { %v492_v21 = vadd.f32 %v491_v7, %v1590_v35 }
 0x11e   :  { %v1611_v50 = vadd.f32 %v751_v61, %v670_v3  ;;  %v596_v3 = vadd.f32 %v595_v47, %v487_v33 }
 0x122   :  { %v755_v1 = vpop.f32.mrf.mxu1 }
 0x123   :  { %v673_v45 = vpop.f32.mrf.mxu0 }
 0x124   :  { %v674_v62 = vadd.f32 %v673_v45, %v572_v14  ;;  %v601_v36 = vpop.f32.mrf.mxu3  ;;  %v496_v24 = vpop.f32.mrf.mxu2 }
 0x125   :  { %v497_v37 = vadd.f32 %v496_v24, %v401_v16  ;;  %v602_v31 = vadd.f32 %v601_v36, %v492_v21 }
 0x126   :  { %v1613_v63 = vadd.f32 %v755_v1, %v674_v62  ;;  %v590_v62 = vadd.f32 %v589_v58, %v482_v59 }
 0x12a   :  { %v759_v6 = vpop.f32.mrf.mxu1 }
 0x12b   :  { %v677_v4 = vpop.f32.mrf.mxu0 }
 0x12c   :  { %v678_v5 = vadd.f32 %v677_v4, %v578_v27  ;;  %v607_v18 = vpop.f32.mrf.mxu3  ;;  %v501_v40 = vpop.f32.mrf.mxu2 }
 0x12d   :  { %v502_v42 = vadd.f32 %v501_v40, %v1533_v46  ;;  %v608_v55 = vadd.f32 %v607_v18, %v497_v37 }
 0x12e   :  { %v1615_v54 = vadd.f32 %v759_v6, %v678_v5 }
 0x132   :  { %v763_v12 = vpop.f32.mrf.mxu1 }
 0x133   :  { %v681_v57 = vpop.f32.mrf.mxu0 }
 0x134   :  { %v682_v9 = vadd.f32 %v681_v57, %v584_v10  ;;  %v613_v20 = vpop.f32.mrf.mxu3  ;;  %v506_v11 = vpop.f32.mrf.mxu2 }
 0x135   :  { %v507_v22 = vadd.f32 %v506_v11, %v1542_v51  ;;  %v614_v29 = vadd.f32 %v613_v20, %v502_v42  ;;  %v801_v42 = vmax.f32 %v1615_v54, 0.0 }
 0x136   :  { %v1617_v13 = vadd.f32 %v763_v12, %v682_v9 }
 0x13a   :  { %v767_v14 = vpop.f32.mrf.mxu1 }
 0x13b   :  { %v685_v17 = vpop.f32.mrf.mxu0 }
 0x13c   :  { %v619_v25 = vpop.f32.mrf.mxu3  ;;  %v511_v34 = vpop.f32.mrf.mxu2  ;;  %v686_v6 = vadd.f32 %v685_v17, %v590_v62 }
 0x13d   :  { %v620_v43 = vadd.f32 %v619_v25, %v507_v22  ;;  %v512_v16 = vadd.f32 %v511_v34, %v1551_v0  ;;  %v800_v22 = vmax.f32 %v1613_v63, 0.0  ;;  %v1676_v63 = vand.u32 4294901760, %v801_v42 }
 0x13e   :  { %v768_v0 = vadd.f32 %v767_v14, %v686_v6  ;;  %v802_v14 = vmax.f32 %v1617_v13, 0.0 }
 0x140   :  { %v1662_v21 = vand.u32 4294901760, %v802_v14 }
 0x142   :  { %v771_v32 = vpop.f32.mrf.mxu1 }
 0x143   :  { %v689_v23 = vpop.f32.mrf.mxu0 }
 0x144   :  { %v625_v45 = vpop.f32.mrf.mxu3  ;;  %v690_v19 = vadd.f32 %v689_v23, %v596_v3 }
 0x145   :  { %v626_v5 = vadd.f32 %v625_v45, %v512_v16  ;;  %v810_v16 = vld [vmem:[%s1898_s3] sm:$0xff]  ;;  %s1243_s3 = smov [#allocation2]  }
 0x146   :  { %v772_v2 = vadd.f32 %v771_v32, %v690_v19  ;;  %v796_v19 = vmax.f32 %v1604_v53, 0.0  ;;  %s1194_s7 = sshll.u32 %s1243_s3, 4  ;;  %s1195_s7 = int_to_ptr.vmem [resolvable:$true] %s1194_s7 }
 0x148   :  { %v804_v58 = vmax.f32 %v772_v2, 0.0 }
 0x14a   :  { %v775_v27 = vpop.f32.mrf.mxu1 }
 0x14b   :  { %v693_v30 = vpop.f32.mrf.mxu0 }
 0x14c   :  { %v694_v51 = vadd.f32 %v693_v30, %v602_v31  ;;  %v798_v31 = vmax.f32 %v1609_v56, 0.0  ;;  %v797_v56 = vmax.f32 %v1607_v15, 0.0  ;;  %v1714_v15 = vand.u32 4294901760, %v810_v16 }
 0x14e   :  { %v776_v60 = vadd.f32 %v775_v27, %v694_v51  ;;  %v803_v27 = vmax.f32 %v768_v0, 0.0  ;;  %v1725_v53 = vand.u32 4294901760, %v797_v56  ;;  %v1736_v0 = vand.u32 4294901760, %v796_v19 }
 0x150   :  { %v805_v36 = vmax.f32 %v776_v60, 0.0 }
 0x152   :  { %v779_v41 = vpop.f32.mrf.mxu1  ;;  %v1634_v40 = vand.u32 4294901760, %v805_v36 }
 0x153   :  { %v697_v39 = vpop.f32.mrf.mxu0 }
 0x154   :  { %v698_v38 = vadd.f32 %v697_v39, %v608_v55  ;;  %v1642_v39 = vand.u32 4294901760, %v804_v58  ;;  %v1656_v25 = vsub.f32 %v805_v36, %v1634_v40 }
 0x156   :  { %v780_v1 = vadd.f32 %v779_v41, %v698_v38  ;;  %v884_v59 = vand.u32 4294901760, %v1656_v25  ;;  %v1687_v38 = vand.u32 4294901760, %v800_v22 }
 0x158   :  { %v806_v9 = vmax.f32 %v780_v1, 0.0  ;;  %v885_v45 = vsub.f32 %v1656_v25, %v884_v59  ;;  %v1712_v1 = vand.u32 4294901760, %v798_v31 }
 0x15a   :  { %v783_v28 = vpop.f32.mrf.mxu1  ;;  %v1629_v23 = vand.u32 4294901760, %v806_v9  ;;  %v886_v2 = vand.u32 4294901760, %v885_v45  ;;  %v1742_v36 = vsub.f32 %v798_v31, %v1712_v1 }
 0x15b   :  { %v701_v10 = vpop.f32.mrf.mxu0 }
 0x15c   :  { %v702_v52 = vadd.f32 %v701_v10, %v614_v29  ;;  %v1645_v41 = vsub.f32 %v806_v9, %v1629_v23  ;;  %v1665_v29 = vsub.f32 %v804_v58, %v1642_v39  ;;  %v926_v31 = vand.u32 4294901760, %v1742_v36 }
 0x15e   :  { %v784_v61 = vadd.f32 %v783_v28, %v702_v52  ;;  %v1653_v28 = vand.u32 4294901760, %v803_v27  ;;  %v878_v55 = vand.u32 4294901760, %v1645_v41  ;;  %v890_v3 = vand.u32 4294901760, %v1665_v29 }
 0x160   :  { %v807_v57 = vmax.f32 %v784_v61, 0.0  ;;  %v1679_v52 = vsub.f32 %v803_v27, %v1653_v28  ;;  %v1704_v61 = vsub.f32 %v801_v42, %v1676_v63  ;;  %v891_v6 = vsub.f32 %v1665_v29, %v890_v3 }
 0x162   :  { %v787_v26 = vpop.f32.mrf.mxu1  ;;  %v1627_v24 = vand.u32 4294901760, %v807_v57  ;;  %v896_v62 = vand.u32 4294901760, %v1679_v52 }
 0x163   :  { %v705_v44 = vpop.f32.mrf.mxu0 }
 0x164   :  { %v706_v46 = vadd.f32 %v705_v44, %v620_v43  ;;  %v1637_v32 = vsub.f32 %v807_v57, %v1627_v24  ;;  %v799_v43 = vmax.f32 %v1611_v50, 0.0  ;;  %v1690_v50 = vsub.f32 %v802_v14, %v1662_v21 }
 0x165   :  { %v795_v57 = vmax.f32 %v1601_v48, 0.0  ;;  %v897_v9 = vsub.f32 %v1679_v52, %v896_v62  ;;  %v1739_v48 = vsub.f32 %v810_v16, %v1714_v15 }
 0x166   :  { %v788_v35 = vadd.f32 %v787_v26, %v706_v46  ;;  %v872_v37 = vand.u32 4294901760, %v1637_v32  ;;  %v879_v26 = vsub.f32 %v1645_v41, %v878_v55  ;;  %v1701_v51 = vand.u32 4294901760, %v799_v43 }
 0x167   :  { %v902_v60 = vand.u32 4294901760, %v1690_v50  ;;  %v1749_v27 = vand.u32 4294901760, %v795_v57  ;;  %v898_v14 = vand.u32 4294901760, %v897_v9 }
 0x168   :  { %v808_v4 = vmax.f32 %v788_v35, 0.0  ;;  %v873_v44 = vsub.f32 %v1637_v32, %v872_v37 }
 0x169   :  { %v903_v58 = vsub.f32 %v1690_v50, %v902_v60 }
 0x16a   :  { %v1625_v12 = vand.u32 4294901760, %v808_v4  ;;  %v791_v7 = vpop.f32.mrf.mxu1  ;;  %v874_v35 = vand.u32 4294901760, %v873_v44 }
 0x16b   :  { %v709_v8 = vpop.f32.mrf.mxu0 }
 0x16c   :  { %v710_v47 = vadd.f32 %v709_v8, %v626_v5  ;;  %v1632_v30 = vsub.f32 %v808_v4, %v1625_v12  ;;  %v1717_v4 = vsub.f32 %v800_v22, %v1687_v38  ;;  %v880_v5 = vand.u32 4294901760, %v879_v26 }
 0x16d   :  { %v1728_v8 = vsub.f32 %v799_v43, %v1701_v51  ;;  %v1763_v43 = vsub.f32 %v796_v19, %v1736_v0 }
 0x16e   :  { %v792_v18 = vadd.f32 %v791_v7, %v710_v47  ;;  %v866_v10 = vand.u32 4294901760, %v1632_v30  ;;  %v908_v47 = vand.u32 4294901760, %v1704_v61  ;;  %v794_v7 = vmax.f32 %v1598_v49, 0.0 }
 0x16f   :  { %v1752_v49 = vsub.f32 %v797_v56, %v1725_v53  ;;  %v920_v22 = vand.u32 4294901760, %v1728_v8 }
 0x170   :  { %v809_v17 = vmax.f32 %v792_v18, 0.0  ;;  %v867_v33 = vsub.f32 %v1632_v30, %v866_v10  ;;  %v892_v18 = vand.u32 4294901760, %v891_v6  ;;  %v909_v42 = vsub.f32 %v1704_v61, %v908_v47 }
 0x171   :  { %v921_v16 = vsub.f32 %v1728_v8, %v920_v22  ;;  %v932_v56 = vand.u32 4294901760, %v1752_v49  ;;  %v938_v6 = vand.u32 4294901760, %v1763_v43 }
 0x172   :  { %v1639_v20 = vand.u32 4294901760, %v809_v17  ;;  %v868_v46 = vand.u32 4294901760, %v867_v33  ;;  %v851_v33 = vand.u32 4294901760, %v1739_v48  ;;  %v910_v26 = vand.u32 4294901760, %v909_v42 }
 0x174   :  { %v1648_v11 = vsub.f32 %v809_v17, %v1639_v20  ;;  %818 = vmatpush.msra.mxu2 %v1639_v20  ;;  %v914_v17 = vand.u32 4294901760, %v1717_v4 }
 0x176   :  { %v860_v13 = vand.u32 4294901760, %v1648_v11  ;;  %820 = vmatpush.msra.mxu2 %v1625_v12  ;;  %v915_v44 = vsub.f32 %v1717_v4, %v914_v17 }
 0x178   :  { %v861_v54 = vsub.f32 %v1648_v11, %v860_v13  ;;  %822 = vmatpush.msra.mxu2 %v1627_v24  ;;  %v916_v19 = vand.u32 4294901760, %v915_v44 }
 0x17a   :  { %824 = vmatpush.msra.mxu2 %v1629_v23  ;;  %v862_v34 = vand.u32 4294901760, %v861_v54  ;;  %v1759_v54 = vand.u32 4294901760, %v794_v7 }
 0x17c   :  { %826 = vmatpush.msra.mxu2 %v1634_v40  ;;  %863 = vmatpush.msra.mxu3 %v862_v34  ;;  %v904_v34 = vand.u32 4294901760, %v903_v58  ;;  %v1782_v45 = vsub.f32 %v794_v7, %v1759_v54  ;;  %v939_v58 = vsub.f32 %v1763_v43, %v938_v6 }
 0x17e   :  { %828 = vmatpush.msra.mxu2 %v1642_v39  ;;  %869 = vmatpush.msra.mxu3 %v868_v46  ;;  %v1771_v46 = vsub.f32 %v795_v57, %v1749_v27  ;;  %v922_v57 = vand.u32 4294901760, %v921_v16  ;;  %v940_v44 = vand.u32 4294901760, %v939_v58 }
 0x180   :  { %830 = vmatpush.msra.mxu2 %v1653_v28  ;;  %875 = vmatpush.msra.mxu3 %v874_v35  ;;  %v852_v35 = vsub.f32 %v1739_v48, %v851_v33  ;;  %v944_v9 = vand.u32 4294901760, %v1771_v46 }
 0x182   :  { %832 = vmatpush.msra.mxu2 %v1662_v21  ;;  %881 = vmatpush.msra.mxu3 %v880_v5  ;;  %v927_v5 = vsub.f32 %v1742_v36, %v926_v31  ;;  %v853_v7 = vand.u32 4294901760, %v852_v35 }
 0x184   :  { %834 = vmatpush.msra.mxu2 %v1676_v63  ;;  %887 = vmatpush.msra.mxu3 %v886_v2  ;;  %v933_v2 = vsub.f32 %v1752_v49, %v932_v56 }
 0x186   :  { %836 = vmatpush.msra.mxu2 %v1687_v38  ;;  %893 = vmatpush.msra.mxu3 %v892_v18  ;;  %v928_v18 = vand.u32 4294901760, %v927_v5  ;;  %v934_v42 = vand.u32 4294901760, %v933_v2 }
 0x188   :  { %838 = vmatpush.msra.mxu2 %v1701_v51  ;;  %899 = vmatpush.msra.mxu3 %v898_v14  ;;  %v950_v14 = vand.u32 4294901760, %v1782_v45 }
 0x18a   :  { %840 = vmatpush.msra.mxu2 %v1712_v1  ;;  %905 = vmatpush.msra.mxu3 %v904_v34  ;;  %v945_v34 = vsub.f32 %v1771_v46, %v944_v9 }
 0x18c   :  { %842 = vmatpush.msra.mxu2 %v1725_v53  ;;  %911 = vmatpush.msra.mxu3 %v910_v26  ;;  %v951_v26 = vsub.f32 %v1782_v45, %v950_v14  ;;  %v946_v16 = vand.u32 4294901760, %v945_v34 }
 0x18e   :  { %844 = vmatpush.msra.mxu2 %v1736_v0  ;;  %917 = vmatpush.msra.mxu3 %v916_v19  ;;  %v952_v35 = vand.u32 4294901760, %v951_v26 }
 0x190   :  { %846 = vmatpush.msra.mxu2 %v1749_v27  ;;  %923 = vmatpush.msra.mxu3 %v922_v57 }
 0x192   :  { %848 = vmatpush.msra.mxu2 %v1759_v54  ;;  %929 = vmatpush.msra.mxu3 %v928_v18 }
 0x193   :  { %854 = vmatmul.f32.vlgmr.msra.gmra.mxu2 %v853_v7 }
 0x194   :  { %961 = vmatpush.msrb.mxu2 %v1648_v11  ;;  %935 = vmatpush.msra.mxu3 %v934_v42 }
 0x196   :  { %964 = vmatpush.msrb.mxu2 %v1632_v30  ;;  %941 = vmatpush.msra.mxu3 %v940_v44  ;;  %v815_v30 = vpop.permute.xlu1 %814 }
 0x198   :  { %967 = vmatpush.msrb.mxu2 %v1637_v32  ;;  %947 = vmatpush.msra.mxu3 %v946_v16 }
 0x19a   :  { %970 = vmatpush.msrb.mxu2 %v1645_v41  ;;  %953 = vmatpush.msra.mxu3 %v952_v35 }
 0x19b   :  { %955 = vmatmul.f32.vlgmr.msra.gmra.mxu3 %v1714_v15 }
 0x19c   :  { %973 = vmatpush.msrb.mxu2 %v1656_v25  ;;  %1014 = vmatpush.msrb.mxu3 %v1639_v20 }
 0x19e   :  { %976 = vmatpush.msrb.mxu2 %v1665_v29  ;;  %1016 = vmatpush.msrb.mxu3 %v1625_v12 }
 0x1a0   :  { %979 = vmatpush.msrb.mxu2 %v1679_v52  ;;  %1018 = vmatpush.msrb.mxu3 %v1627_v24 }
 0x1a2   :  { %982 = vmatpush.msrb.mxu2 %v1690_v50  ;;  %1020 = vmatpush.msrb.mxu3 %v1629_v23 }
 0x1a4   :  { %985 = vmatpush.msrb.mxu2 %v1704_v61  ;;  %1022 = vmatpush.msrb.mxu3 %v1634_v40 }
 0x1a6   :  { %988 = vmatpush.msrb.mxu2 %v1717_v4  ;;  %1024 = vmatpush.msrb.mxu3 %v1642_v39 }
 0x1a8   :  { %991 = vmatpush.msrb.mxu2 %v1728_v8  ;;  %1026 = vmatpush.msrb.mxu3 %v1653_v28 }
 0x1aa   :  { %994 = vmatpush.msrb.mxu2 %v1742_v36  ;;  %1028 = vmatpush.msrb.mxu3 %v1662_v21 }
 0x1ac   :  { %997 = vmatpush.msrb.mxu2 %v1752_v49  ;;  %1030 = vmatpush.msrb.mxu3 %v1676_v63 }
 0x1ae   :  { %1000 = vmatpush.msrb.mxu2 %v1763_v43  ;;  %1032 = vmatpush.msrb.mxu3 %v1687_v38 }
 0x1b0   :  { %1003 = vmatpush.msrb.mxu2 %v1771_v46  ;;  %1034 = vmatpush.msrb.mxu3 %v1701_v51 }
 0x1b2   :  { %1006 = vmatpush.msrb.mxu2 %v1782_v45  ;;  %1036 = vmatpush.msrb.mxu3 %v1712_v1 }
 0x1b3   :  { %1009 = vmatmul.f32.vlgmr.msrb.gmra.mxu2 %v1739_v48 }
 0x1b4   :  { %1055 = vmatpush.msra.mxu2 %v860_v13  ;;  %1038 = vmatpush.msrb.mxu3 %v1725_v53 }
 0x1b6   :  { %1059 = vmatpush.msra.mxu2 %v866_v10  ;;  %1040 = vmatpush.msrb.mxu3 %v1736_v0 }
 0x1b8   :  { %1063 = vmatpush.msra.mxu2 %v872_v37  ;;  %1042 = vmatpush.msrb.mxu3 %v1749_v27 }
 0x1ba   :  { %1067 = vmatpush.msra.mxu2 %v878_v55  ;;  %1044 = vmatpush.msrb.mxu3 %v1759_v54 }
 0x1bb   :  { %1048 = vmatmul.f32.vlgmr.msrb.gmra.mxu3 %v851_v33 }
 0x1bc   :  { %1071 = vmatpush.msra.mxu2 %v884_v59  ;;  %1122 = vmatpush.msra.mxu3 %v1639_v20 }
 0x1be   :  { %1075 = vmatpush.msra.mxu2 %v890_v3  ;;  %1124 = vmatpush.msra.mxu3 %v1625_v12 }
 0x1c0   :  { %1079 = vmatpush.msra.mxu2 %v896_v62  ;;  %1126 = vmatpush.msra.mxu3 %v1627_v24 }
 0x1c2   :  { %1083 = vmatpush.msra.mxu2 %v902_v60  ;;  %1128 = vmatpush.msra.mxu3 %v1629_v23 }
 0x1c4   :  { %1087 = vmatpush.msra.mxu2 %v908_v47  ;;  %1130 = vmatpush.msra.mxu3 %v1634_v40 }
 0x1c6   :  { %1091 = vmatpush.msra.mxu2 %v914_v17  ;;  %1132 = vmatpush.msra.mxu3 %v1642_v39 }
 0x1c8   :  { %1095 = vmatpush.msra.mxu2 %v920_v22  ;;  %1134 = vmatpush.msra.mxu3 %v1653_v28 }
 0x1ca   :  { %1099 = vmatpush.msra.mxu2 %v926_v31  ;;  %1136 = vmatpush.msra.mxu3 %v1662_v21 }
 0x1cc   :  { %1103 = vmatpush.msra.mxu2 %v932_v56  ;;  %1138 = vmatpush.msra.mxu3 %v1676_v63 }
 0x1ce   :  { %1107 = vmatpush.msra.mxu2 %v938_v6  ;;  %1140 = vmatpush.msra.mxu3 %v1687_v38 }
 0x1d0   :  { %1111 = vmatpush.msra.mxu2 %v944_v9  ;;  %1142 = vmatpush.msra.mxu3 %v1701_v51 }
 0x1d2   :  { %1115 = vmatpush.msra.mxu2 %v950_v14  ;;  %1144 = vmatpush.msra.mxu3 %v1712_v1 }
 0x1d3   :  { %1117 = vmatmul.f32.vlgmr.msra.gmra.mxu2 %v1714_v15 }
 0x1d4   :  { %1146 = vmatpush.msra.mxu3 %v1725_v53 }
 0x1d6   :  { %1148 = vmatpush.msra.mxu3 %v1736_v0 }
 0x1d8   :  { %1150 = vmatpush.msra.mxu3 %v1749_v27 }
 0x1da   :  { %1152 = vmatpush.msra.mxu3 %v1759_v54 }
 0x1db   :  { %1154 = vmatmul.f32.vlgmr.msra.gmra.mxu3 %v1714_v15 }
 0x216   :  { %v855_v12 = vpop.f32.mrf.mxu2 }
 0x217   :  { %v856_v40 = vadd.f32 %v855_v12, %v815_v30 }
 0x21e   :  { %v956_v24 = vpop.f32.mrf.mxu3 }
 0x21f   :  { %v957_v20 = vadd.f32 %v956_v24, %v856_v40 }
 0x236   :  { %v1010_v23 = vpop.f32.mrf.mxu2 }
 0x237   :  { %v1011_v39 = vadd.f32 %v1010_v23, %v957_v20 }
 0x23e   :  { %v1049_v32 = vpop.f32.mrf.mxu3 }
 0x23f   :  { %v1050_v11 = vadd.f32 %v1049_v32, %v1011_v39 }
 0x256   :  { %v1118_v41 = vpop.f32.mrf.mxu2 }
 0x257   :  { %v1119_v10 = vadd.f32 %v1118_v41, %v1050_v11 }
 0x25e   :  { %v1155_v28 = vpop.f32.mrf.mxu3 }
 0x25f   :  { %v1156_v25 = vadd.f32 %v1155_v28, %v1119_v10 }
 0x261   :  { %v1158_v13 = vrot.slane %v1156_v25, 4 }
 0x263   :  { %v1159_v37 = vmax.f32 %v1156_v25, %v1158_v13 }
 0x265   :  { %v1160_v21 = vrot.slane %v1159_v37, 2 }
 0x267   :  { %v1161_v29 = vmax.f32 %v1159_v37, %v1160_v21 }
 0x269   :  { %v1162_v55 = vrot.slane %v1161_v29, 1 }
 0x26b   :  { %v1163_v63 = vmax.f32 %v1161_v29, %v1162_v55 }
 0x26d   :  { %v1164_v52 = vsub.f32 %v1156_v25, %v1163_v63 }
 0x26f   :  { %v1165_v59 = vmul.f32 1.442695, %v1164_v52 }
 0x271   :  { %1212 = vpow2.f32 %v1165_v59 }
 0x277   :  { %v1213_v38 = vpop.eup %1212 }
 0x278   :  { %v1167_v50 = vrot.slane %v1213_v38, 4 }
 0x27a   :  { %v1168_v3 = vadd.f32 %v1213_v38, %v1167_v50 }
 0x27c   :  { %v1169_v51 = vrot.slane %v1168_v3, 2 }
 0x27e   :  { %v1170_v61 = vadd.f32 %v1169_v51, %v1168_v3 }
 0x280   :  { %v1171_v62 = vrot.slane %v1170_v61, 1 }
 0x282   :  { %v1172_v1 = vadd.f32 %v1171_v62, %v1170_v61 }
 0x284   :  { %1214 = vrcp.f32 %v1172_v1  ;;  %v1184_v53 = vand.u32 2147483648, %v1172_v1  ;;  %v1182_v47 = vand.u32 2147483647, %v1172_v1  ;;  %vm1178_vm2 = vweird.f32 %v1172_v1 }
 0x286   :  { %v1185_v48 = vor.u32 1.1754944e-38, %v1184_v53  ;;  %vm1183_vm4 = vcmp.eq.f32.partialorder %v1182_v47, 8.507059e+37 }
 0x28a   :  { %v1215_v15 = vpop.eup %1214 }
 0x28b   :  { %v1174_v4 = vmul.f32 %v1215_v15, %v1172_v1  ;;  %vm1179_vm1 = vweird.f32 %v1215_v15 }
 0x28c   :  { %vm1180_vm3 = vmor %vm1178_vm2, %vm1179_vm1 }
 0x28d   :  { %v1175_v60 = vsub.f32 1.0, %v1174_v4 }
 0x28f   :  { %v1176_v8 = vmul.f32 %v1215_v15, %v1175_v60 }
 0x291   :  { %v1177_v0 = vadd.f32 %v1215_v15, %v1176_v8 }
 0x293   :  { %v1181_v36 = vsel %vm1180_vm3, %v1215_v15, %v1177_v0 }
 0x294   :  { %v1186_v17 = vsel %vm1183_vm4, %v1185_v48, %v1181_v36 }
 0x295   :  { %v1187_v27 = vmul.f32 %v1213_v38, %v1186_v17 }
 0x297   :  { %1188 = vst [vmem:[#allocation2] sm:$0xff] %v1187_v27 }
 0x298   :  { %1199 = dma.vmem_to_hbm [thread:$0]  %s1195_s7, 128, %s1197_s10, [#allocation3]  }
 0x299   :  { %1240 = dma.done.wait [#allocation3], 128  }
 0x29a   :  { %1241 = vsyncadd [#allocation3], 4294967168 }
 0x29b   :  { %1204 = vsyncpa [#allocation3], 1 }

</bundles_post_ra>
